<compile_context>
chip_gen: v6e
topology: v6e:2x2x1
jax: 0.10.0
libtpu: 0.0.40
codegen_flags: <defaults>
</compile_context>

<pallas_src>
import jax
import jax.numpy as jnp
from jax.experimental import pallas as pl
from jax.experimental.pallas import tpu as pltpu


def _store_heads(i, pd, pe, q_ref, k_ref, v_ref):
    """Per-head split + seq-concat writeback for batch element `i` of the block.

    pd : (N, 3*inner) f32  -> q | k_d | v_d   (column blocks)
    pe : (N, 2*inner) f32  -> k_e | v_e
    """
    N = q_ref.shape[2]
    heads = q_ref.shape[1]
    dh = q_ref.shape[3]
    inner = heads * dh
    odt = q_ref.dtype
    for h in range(heads):
        lo = h * dh
        q_ref[i, h] = pd[:, lo:lo + dh].astype(odt)
        k_ref[i, h, :N, :] = pd[:, inner + lo:inner + lo + dh].astype(odt)
        v_ref[i, h, :N, :] = pd[:, 2 * inner + lo:2 * inner + lo + dh].astype(odt)
        k_ref[i, h, N:, :] = pe[:, lo:lo + dh].astype(odt)
        v_ref[i, h, N:, :] = pe[:, inner + lo:inner + lo + dh].astype(odt)


def _self_kernel(x_ref, w5_ref, b5_ref, q_ref, k_ref, v_ref):
    # x_ref : (bb, N, C)   w5_ref : (C, 5*inner)   b5_ref : (1, 5*inner)
    bb, N, C = x_ref.shape
    heads, dh = q_ref.shape[1], q_ref.shape[3]
    inner = heads * dh
    xm = x_ref[...].reshape(bb * N, C)                       # no-op relayout (N % 8 == 0 or bb == 1)
    proj = (jnp.dot(xm, w5_ref[...], preferred_element_type=jnp.float32)
            + b5_ref[...])                                   # (bb*N, 5*inner)
    for i in range(bb):
        r0 = i * N
        pd = proj[r0:r0 + N, :3 * inner]
        pe = proj[r0:r0 + N, 3 * inner:]
        _store_heads(i, pd, pe, q_ref, k_ref, v_ref)


def _cross_kernel(x_ref, akv_ref, wqkv_ref, bqkv_ref, wkv_ref, bkv_ref,
                  q_ref, k_ref, v_ref):
    # x_ref / akv_ref : (bb, N, C)
    bb, N, C = x_ref.shape
    heads, dh = q_ref.shape[1], q_ref.shape[3]
    inner = heads * dh
    xm = x_ref[...].reshape(bb * N, C)
    am = akv_ref[...].reshape(bb * N, C)
    proj_dec = (jnp.dot(xm, wqkv_ref[...], preferred_element_type=jnp.float32)
                + bqkv_ref[...])                             # (bb*N, 3*inner)
    proj_enc = (jnp.dot(am, wkv_ref[...], preferred_element_type=jnp.float32)
                + bkv_ref[...])                              # (bb*N, 2*inner)
    for i in range(bb):
        r0 = i * N
        _store_heads(i, proj_dec[r0:r0 + N], proj_enc[r0:r0 + N],
                     q_ref, k_ref, v_ref)


def _pick_block_b(B, N):
    """Largest divisor of B (<= 8) such that block_b * N stays a modest row count.
    Row-merging across batch is only valid as a layout no-op when N % 8 == 0."""
    if N % 8 != 0:
        return 1
    best = 1
    for cand in range(1, B + 1):
        if B % cand == 0 and cand <= 8 and cand * N <= 1024:
            best = cand
    return best


def linear_projection_concat_kv(x, wqkv, bqkv, wkv, bkv, heads, attn_kv=None):
    """Pallas implementation of LinearProjection_Concat_kv.forward.

    x       : (B, N, C)
    wqkv    : (3*inner, C), bqkv: (3*inner,)   -- PyTorch nn.Linear (out, in) layout
    wkv     : (2*inner, C), bkv : (2*inner,)
    attn_kv : (B, N, C) or None (defaults to x, as in the module)
    Returns (q, k, v): (B, H, N, dh), (B, H, 2N, dh), (B, H, 2N, dh).
    """
    B, N, C = x.shape
    assert C % heads == 0
    dh = C // heads
    inner = heads * dh               # module's reshape is only consistent when inner == C
    assert wqkv.shape == (3 * inner, C) and bqkv.shape == (3 * inner,)
    assert wkv.shape == (2 * inner, C) and bkv.shape == (2 * inner,)

    bb = _pick_block_b(B, N)
    grid = (B // bb,)

    out_shape = (
        jax.ShapeDtypeStruct((B, heads, N, dh), x.dtype),
        jax.ShapeDtypeStruct((B, heads, 2 * N, dh), x.dtype),
        jax.ShapeDtypeStruct((B, heads, 2 * N, dh), x.dtype),
    )
    out_specs = (
        pl.BlockSpec((bb, heads, N, dh), lambda b: (b, 0, 0, 0)),
        pl.BlockSpec((bb, heads, 2 * N, dh), lambda b: (b, 0, 0, 0)),
        pl.BlockSpec((bb, heads, 2 * N, dh), lambda b: (b, 0, 0, 0)),
    )
    cparams = pltpu.CompilerParams(dimension_semantics=("parallel",))

    if attn_kv is None:
        # Fused self path: one GEMM against the concatenated 5*inner weight,
        # x is read from HBM exactly once.
        w5 = jnp.concatenate([wqkv.T, wkv.T], axis=1)            # (C, 5*inner)
        b5 = jnp.concatenate([bqkv, bkv]).reshape(1, 5 * inner)  # (1, 5*inner)
        in_specs = [
            pl.BlockSpec((bb, N, C), lambda b: (b, 0, 0)),       # x
            pl.BlockSpec((C, 5 * inner), lambda b: (0, 0)),      # fused W (resident)
            pl.BlockSpec((1, 5 * inner), lambda b: (0, 0)),      # fused bias (resident)
        ]
        return pl.pallas_call(
            _self_kernel,
            out_shape=out_shape,
            grid=grid,
            in_specs=in_specs,
            out_specs=out_specs,
            compiler_params=cparams,
        )(x, w5, b5)

    # Cross path: two GEMMs on different inputs.
    in_specs = [
        pl.BlockSpec((bb, N, C), lambda b: (b, 0, 0)),           # x
        pl.BlockSpec((bb, N, C), lambda b: (b, 0, 0)),           # attn_kv
        pl.BlockSpec((C, 3 * inner), lambda b: (0, 0)),          # Wqkv (resident)
        pl.BlockSpec((1, 3 * inner), lambda b: (0, 0)),          # bqkv (resident)
        pl.BlockSpec((C, 2 * inner), lambda b: (0, 0)),          # Wkv  (resident)
        pl.BlockSpec((1, 2 * inner), lambda b: (0, 0)),          # bkv  (resident)
    ]
    return pl.pallas_call(
        _cross_kernel,
        out_shape=out_shape,
        grid=grid,
        in_specs=in_specs,
        out_specs=out_specs,
        compiler_params=cparams,
    )(x, attn_kv, wqkv.T, bqkv.reshape(1, 3 * inner), wkv.T, bkv.reshape(1, 2 * inner))


def reference_forward(x, wqkv, bqkv, wkv, bkv, heads, attn_kv=None):
    """Pure-JAX reference matching the PyTorch module."""
    B, N, C = x.shape
    akv = x if attn_kv is None else attn_kv
    dh = C // heads
    qkv = (x @ wqkv.T + bqkv).reshape(B, N, 3, heads, dh).transpose(2, 0, 3, 1, 4)
    kv = (akv @ wkv.T + bkv).reshape(B, N, 2, heads, dh).transpose(2, 0, 3, 1, 4)
    q, k_d, v_d = qkv[0], qkv[1], qkv[2]
    k_e, v_e = kv[0], kv[1]
    k = jnp.concatenate([k_d, k_e], axis=2)
    v = jnp.concatenate([v_d, v_e], axis=2)
    return q, k, v


if __name__ == "__main__":
    key = jax.random.PRNGKey(0)
    key_x, key_a, key_w1, key_b1, key_w2, key_b2 = jax.random.split(key, 6)

    # Small shapes consistent with the module: dim = heads * dim_head (= inner_dim).
    B, N, heads, dim_head = 2, 8, 4, 8
    C = heads * dim_head            # 32
    inner = heads * dim_head        # 32

    x = jax.random.normal(key_x, (B, N, C), dtype=jnp.float32)
    attn_kv = jax.random.normal(key_a, (B, N, C), dtype=jnp.float32)

    # Deterministic nn.Linear-style init: uniform(-1/sqrt(fan_in), 1/sqrt(fan_in)).
    bound = 1.0 / (C ** 0.5)
    wqkv = jax.random.uniform(key_w1, (3 * inner, C), minval=-bound, maxval=bound,
                              dtype=jnp.float32)
    bqkv = jax.random.uniform(key_b1, (3 * inner,), minval=-bound, maxval=bound,
                              dtype=jnp.float32)
    wkv = jax.random.uniform(key_w2, (2 * inner, C), minval=-bound, maxval=bound,
                             dtype=jnp.float32)
    bkv = jax.random.uniform(key_b2, (2 * inner,), minval=-bound, maxval=bound,
                             dtype=jnp.float32)

    # Path 1: attn_kv=None (self-attention, module default; fused-weight kernel).
    q, k, v = linear_projection_concat_kv(x, wqkv, bqkv, wkv, bkv, heads)
    q, k, v = jax.block_until_ready((q, k, v))
    rq, rk, rv = reference_forward(x, wqkv, bqkv, wkv, bkv, heads)
    assert q.shape == (B, heads, N, dim_head)
    assert k.shape == (B, heads, 2 * N, dim_head)
    assert v.shape == (B, heads, 2 * N, dim_head)
    for got, ref in ((q, rq), (k, rk), (v, rv)):
        assert jnp.allclose(got, ref, atol=1e-5, rtol=1e-5), (
            float(jnp.max(jnp.abs(got - ref))))

    # Path 2: explicit attn_kv (cross attention; two-GEMM kernel).
    qc, kc, vc = linear_projection_concat_kv(x, wqkv, bqkv, wkv, bkv, heads,
                                             attn_kv=attn_kv)
    qc, kc, vc = jax.block_until_ready((qc, kc, vc))
    rqc, rkc, rvc = reference_forward(x, wqkv, bqkv, wkv, bkv, heads,
                                      attn_kv=attn_kv)
    for got, ref in ((qc, rqc), (kc, rkc), (vc, rvc)):
        assert jnp.allclose(got, ref, atol=1e-5, rtol=1e-5), (
            float(jnp.max(jnp.abs(got - ref))))

    # Dropout arg of the module is unused in its forward; nothing to implement.
    print("KERNEL_OK")
</pallas_src>

<mosaic_0001>
module attributes {stable_mosaic.version = 11 : i64} {
  func.func @_self_kernel(%arg0: i32, %arg1: memref<2x8x32xf32, #tpu.memory_space<vmem>>, %arg2: memref<32x160xf32, #tpu.memory_space<vmem>>, %arg3: memref<1x160xf32, #tpu.memory_space<vmem>>, %arg4: memref<2x4x8x8xf32, #tpu.memory_space<vmem>>, %arg5: memref<2x4x16x8xf32, #tpu.memory_space<vmem>>, %arg6: memref<2x4x16x8xf32, #tpu.memory_space<vmem>>) attributes {dimension_semantics = [#tpu.dimension_semantics<parallel>], iteration_bounds = array<i64: 1>, scalar_prefetch = 0 : i64, scratch_operands = 0 : i64, tpu.core_type = #tpu.core_type<tc>, window_params = [{transform_indices = @transform_0, window_bounds = array<i64: 2, 8, 32>}, {pipeline_mode = #tpu.pipeline_mode<synchronous>, transform_indices = @transform_1, window_bounds = array<i64: 32, 160>}, {pipeline_mode = #tpu.pipeline_mode<synchronous>, transform_indices = @transform_2, window_bounds = array<i64: 1, 160>}, {transform_indices = @transform_3, window_bounds = array<i64: 2, 4, 8, 8>}, {transform_indices = @transform_4, window_bounds = array<i64: 2, 4, 16, 8>}, {transform_indices = @transform_5, window_bounds = array<i64: 2, 4, 16, 8>}]} {
    %c0 = arith.constant 0 : index
    %c0_0 = arith.constant 0 : index
    %c0_1 = arith.constant 0 : index
    %0 = vector.load %arg1[%c0, %c0_0, %c0_1] : memref<2x8x32xf32, #tpu.memory_space<vmem>>, vector<2x8x32xf32>
    %1 = vector.shape_cast %0 : vector<2x8x32xf32> to vector<16x32xf32>
    %c0_2 = arith.constant 0 : index
    %c0_3 = arith.constant 0 : index
    %2 = vector.load %arg2[%c0_2, %c0_3] : memref<32x160xf32, #tpu.memory_space<vmem>>, vector<32x160xf32>
    %cst = arith.constant dense<0.000000e+00> : vector<16x160xf32>
    %3 = tpu.matmul %1, %2, %cst {dimension_numbers = #tpu.dot_dimension_numbers<[1], [0], [0], [1], [0, 0, 1, 1], [], []>} : vector<16x32xf32>, vector<32x160xf32>, vector<16x160xf32> -> vector<16x160xf32>
    %c0_4 = arith.constant 0 : index
    %c0_5 = arith.constant 0 : index
    %4 = vector.load %arg3[%c0_4, %c0_5] : memref<1x160xf32, #tpu.memory_space<vmem>>, vector<1x160xf32>
    %5 = vector.broadcast %4 : vector<1x160xf32> to vector<16x160xf32>
    %6 = arith.addf %3, %5 : vector<16x160xf32>
    %7 = vector.extract_strided_slice %6 {offsets = [0, 0], sizes = [8, 96], strides = [1, 1]} : vector<16x160xf32> to vector<8x96xf32>
    %8 = vector.extract_strided_slice %6 {offsets = [0, 96], sizes = [8, 64], strides = [1, 1]} : vector<16x160xf32> to vector<8x64xf32>
    %9 = vector.extract_strided_slice %7 {offsets = [0, 0], sizes = [8, 8], strides = [1, 1]} : vector<8x96xf32> to vector<8x8xf32>
    %c0_6 = arith.constant 0 : index
    %c0_7 = arith.constant 0 : index
    %c0_8 = arith.constant 0 : index
    %c0_9 = arith.constant 0 : index
    %10 = vector.load %arg4[%c0_6, %c0_7, %c0_8, %c0_9] : memref<2x4x8x8xf32, #tpu.memory_space<vmem>>, vector<1x1x8x8xf32>
    %11 = vector.shape_cast %10 : vector<1x1x8x8xf32> to vector<8x8xf32>
    %12 = vector.shape_cast %9 : vector<8x8xf32> to vector<1x1x8x8xf32>
    tpu.vector_store %arg4[%c0_6, %c0_7, %c0_8, %c0_9], %12 {strides = array<i32>} : memref<2x4x8x8xf32, #tpu.memory_space<vmem>>, vector<1x1x8x8xf32>,
    %13 = vector.extract_strided_slice %7 {offsets = [0, 32], sizes = [8, 8], strides = [1, 1]} : vector<8x96xf32> to vector<8x8xf32>
    %c0_10 = arith.constant 0 : index
    %c0_11 = arith.constant 0 : index
    %c0_12 = arith.constant 0 : index
    %c0_13 = arith.constant 0 : index
    %14 = vector.load %arg5[%c0_10, %c0_11, %c0_12, %c0_13] : memref<2x4x16x8xf32, #tpu.memory_space<vmem>>, vector<1x1x8x8xf32>
    %15 = vector.shape_cast %14 : vector<1x1x8x8xf32> to vector<8x8xf32>
    %16 = vector.shape_cast %13 : vector<8x8xf32> to vector<1x1x8x8xf32>
    tpu.vector_store %arg5[%c0_10, %c0_11, %c0_12, %c0_13], %16 {strides = array<i32>} : memref<2x4x16x8xf32, #tpu.memory_space<vmem>>, vector<1x1x8x8xf32>,
    %17 = vector.extract_strided_slice %7 {offsets = [0, 64], sizes = [8, 8], strides = [1, 1]} : vector<8x96xf32> to vector<8x8xf32>
    %c0_14 = arith.constant 0 : index
    %c0_15 = arith.constant 0 : index
    %c0_16 = arith.constant 0 : index
    %c0_17 = arith.constant 0 : index
    %18 = vector.load %arg6[%c0_14, %c0_15, %c0_16, %c0_17] : memref<2x4x16x8xf32, #tpu.memory_space<vmem>>, vector<1x1x8x8xf32>
    %19 = vector.shape_cast %18 : vector<1x1x8x8xf32> to vector<8x8xf32>
    %20 = vector.shape_cast %17 : vector<8x8xf32> to vector<1x1x8x8xf32>
    tpu.vector_store %arg6[%c0_14, %c0_15, %c0_16, %c0_17], %20 {strides = array<i32>} : memref<2x4x16x8xf32, #tpu.memory_space<vmem>>, vector<1x1x8x8xf32>,
    %21 = vector.extract_strided_slice %8 {offsets = [0, 0], sizes = [8, 8], strides = [1, 1]} : vector<8x64xf32> to vector<8x8xf32>
    %c0_18 = arith.constant 0 : index
    %c0_19 = arith.constant 0 : index
    %c8 = arith.constant 8 : index
    %c0_20 = arith.constant 0 : index
    %22 = vector.load %arg5[%c0_18, %c0_19, %c8, %c0_20] : memref<2x4x16x8xf32, #tpu.memory_space<vmem>>, vector<1x1x8x8xf32>
    %23 = vector.shape_cast %22 : vector<1x1x8x8xf32> to vector<8x8xf32>
    %24 = vector.shape_cast %21 : vector<8x8xf32> to vector<1x1x8x8xf32>
    tpu.vector_store %arg5[%c0_18, %c0_19, %c8, %c0_20], %24 {strides = array<i32>} : memref<2x4x16x8xf32, #tpu.memory_space<vmem>>, vector<1x1x8x8xf32>,
    %25 = vector.extract_strided_slice %8 {offsets = [0, 32], sizes = [8, 8], strides = [1, 1]} : vector<8x64xf32> to vector<8x8xf32>
    %c0_21 = arith.constant 0 : index
    %c0_22 = arith.constant 0 : index
    %c8_23 = arith.constant 8 : index
    %c0_24 = arith.constant 0 : index
    %26 = vector.load %arg6[%c0_21, %c0_22, %c8_23, %c0_24] : memref<2x4x16x8xf32, #tpu.memory_space<vmem>>, vector<1x1x8x8xf32>
    %27 = vector.shape_cast %26 : vector<1x1x8x8xf32> to vector<8x8xf32>
    %28 = vector.shape_cast %25 : vector<8x8xf32> to vector<1x1x8x8xf32>
    tpu.vector_store %arg6[%c0_21, %c0_22, %c8_23, %c0_24], %28 {strides = array<i32>} : memref<2x4x16x8xf32, #tpu.memory_space<vmem>>, vector<1x1x8x8xf32>,
    %29 = vector.extract_strided_slice %7 {offsets = [0, 8], sizes = [8, 8], strides = [1, 1]} : vector<8x96xf32> to vector<8x8xf32>
    %c0_25 = arith.constant 0 : index
    %c1 = arith.constant 1 : index
    %c0_26 = arith.constant 0 : index
    %c0_27 = arith.constant 0 : index
    %30 = vector.load %arg4[%c0_25, %c1, %c0_26, %c0_27] : memref<2x4x8x8xf32, #tpu.memory_space<vmem>>, vector<1x1x8x8xf32>
    %31 = vector.shape_cast %30 : vector<1x1x8x8xf32> to vector<8x8xf32>
    %32 = vector.shape_cast %29 : vector<8x8xf32> to vector<1x1x8x8xf32>
    tpu.vector_store %arg4[%c0_25, %c1, %c0_26, %c0_27], %32 {strides = array<i32>} : memref<2x4x8x8xf32, #tpu.memory_space<vmem>>, vector<1x1x8x8xf32>,
    %33 = vector.extract_strided_slice %7 {offsets = [0, 40], sizes = [8, 8], strides = [1, 1]} : vector<8x96xf32> to vector<8x8xf32>
    %c0_28 = arith.constant 0 : index
    %c1_29 = arith.constant 1 : index
    %c0_30 = arith.constant 0 : index
    %c0_31 = arith.constant 0 : index
    %34 = vector.load %arg5[%c0_28, %c1_29, %c0_30, %c0_31] : memref<2x4x16x8xf32, #tpu.memory_space<vmem>>, vector<1x1x8x8xf32>
    %35 = vector.shape_cast %34 : vector<1x1x8x8xf32> to vector<8x8xf32>
    %36 = vector.shape_cast %33 : vector<8x8xf32> to vector<1x1x8x8xf32>
    tpu.vector_store %arg5[%c0_28, %c1_29, %c0_30, %c0_31], %36 {strides = array<i32>} : memref<2x4x16x8xf32, #tpu.memory_space<vmem>>, vector<1x1x8x8xf32>,
    %37 = vector.extract_strided_slice %7 {offsets = [0, 72], sizes = [8, 8], strides = [1, 1]} : vector<8x96xf32> to vector<8x8xf32>
    %c0_32 = arith.constant 0 : index
    %c1_33 = arith.constant 1 : index
    %c0_34 = arith.constant 0 : index
    %c0_35 = arith.constant 0 : index
    %38 = vector.load %arg6[%c0_32, %c1_33, %c0_34, %c0_35] : memref<2x4x16x8xf32, #tpu.memory_space<vmem>>, vector<1x1x8x8xf32>
    %39 = vector.shape_cast %38 : vector<1x1x8x8xf32> to vector<8x8xf32>
    %40 = vector.shape_cast %37 : vector<8x8xf32> to vector<1x1x8x8xf32>
    tpu.vector_store %arg6[%c0_32, %c1_33, %c0_34, %c0_35], %40 {strides = array<i32>} : memref<2x4x16x8xf32, #tpu.memory_space<vmem>>, vector<1x1x8x8xf32>,
    %41 = vector.extract_strided_slice %8 {offsets = [0, 8], sizes = [8, 8], strides = [1, 1]} : vector<8x64xf32> to vector<8x8xf32>
    %c0_36 = arith.constant 0 : index
    %c1_37 = arith.constant 1 : index
    %c8_38 = arith.constant 8 : index
    %c0_39 = arith.constant 0 : index
    %42 = vector.load %arg5[%c0_36, %c1_37, %c8_38, %c0_39] : memref<2x4x16x8xf32, #tpu.memory_space<vmem>>, vector<1x1x8x8xf32>
    %43 = vector.shape_cast %42 : vector<1x1x8x8xf32> to vector<8x8xf32>
    %44 = vector.shape_cast %41 : vector<8x8xf32> to vector<1x1x8x8xf32>
    tpu.vector_store %arg5[%c0_36, %c1_37, %c8_38, %c0_39], %44 {strides = array<i32>} : memref<2x4x16x8xf32, #tpu.memory_space<vmem>>, vector<1x1x8x8xf32>,
    %45 = vector.extract_strided_slice %8 {offsets = [0, 40], sizes = [8, 8], strides = [1, 1]} : vector<8x64xf32> to vector<8x8xf32>
    %c0_40 = arith.constant 0 : index
    %c1_41 = arith.constant 1 : index
    %c8_42 = arith.constant 8 : index
    %c0_43 = arith.constant 0 : index
    %46 = vector.load %arg6[%c0_40, %c1_41, %c8_42, %c0_43] : memref<2x4x16x8xf32, #tpu.memory_space<vmem>>, vector<1x1x8x8xf32>
    %47 = vector.shape_cast %46 : vector<1x1x8x8xf32> to vector<8x8xf32>
    %48 = vector.shape_cast %45 : vector<8x8xf32> to vector<1x1x8x8xf32>
    tpu.vector_store %arg6[%c0_40, %c1_41, %c8_42, %c0_43], %48 {strides = array<i32>} : memref<2x4x16x8xf32, #tpu.memory_space<vmem>>, vector<1x1x8x8xf32>,
    %49 = vector.extract_strided_slice %7 {offsets = [0, 16], sizes = [8, 8], strides = [1, 1]} : vector<8x96xf32> to vector<8x8xf32>
    %c0_44 = arith.constant 0 : index
    %c2 = arith.constant 2 : index
    %c0_45 = arith.constant 0 : index
    %c0_46 = arith.constant 0 : index
    %50 = vector.load %arg4[%c0_44, %c2, %c0_45, %c0_46] : memref<2x4x8x8xf32, #tpu.memory_space<vmem>>, vector<1x1x8x8xf32>
    %51 = vector.shape_cast %50 : vector<1x1x8x8xf32> to vector<8x8xf32>
    %52 = vector.shape_cast %49 : vector<8x8xf32> to vector<1x1x8x8xf32>
    tpu.vector_store %arg4[%c0_44, %c2, %c0_45, %c0_46], %52 {strides = array<i32>} : memref<2x4x8x8xf32, #tpu.memory_space<vmem>>, vector<1x1x8x8xf32>,
    %53 = vector.extract_strided_slice %7 {offsets = [0, 48], sizes = [8, 8], strides = [1, 1]} : vector<8x96xf32> to vector<8x8xf32>
    %c0_47 = arith.constant 0 : index
    %c2_48 = arith.constant 2 : index
    %c0_49 = arith.constant 0 : index
    %c0_50 = arith.constant 0 : index
    %54 = vector.load %arg5[%c0_47, %c2_48, %c0_49, %c0_50] : memref<2x4x16x8xf32, #tpu.memory_space<vmem>>, vector<1x1x8x8xf32>
    %55 = vector.shape_cast %54 : vector<1x1x8x8xf32> to vector<8x8xf32>
    %56 = vector.shape_cast %53 : vector<8x8xf32> to vector<1x1x8x8xf32>
    tpu.vector_store %arg5[%c0_47, %c2_48, %c0_49, %c0_50], %56 {strides = array<i32>} : memref<2x4x16x8xf32, #tpu.memory_space<vmem>>, vector<1x1x8x8xf32>,
    %57 = vector.extract_strided_slice %7 {offsets = [0, 80], sizes = [8, 8], strides = [1, 1]} : vector<8x96xf32> to vector<8x8xf32>
    %c0_51 = arith.constant 0 : index
    %c2_52 = arith.constant 2 : index
    %c0_53 = arith.constant 0 : index
    %c0_54 = arith.constant 0 : index
    %58 = vector.load %arg6[%c0_51, %c2_52, %c0_53, %c0_54] : memref<2x4x16x8xf32, #tpu.memory_space<vmem>>, vector<1x1x8x8xf32>
    %59 = vector.shape_cast %58 : vector<1x1x8x8xf32> to vector<8x8xf32>
    %60 = vector.shape_cast %57 : vector<8x8xf32> to vector<1x1x8x8xf32>
    tpu.vector_store %arg6[%c0_51, %c2_52, %c0_53, %c0_54], %60 {strides = array<i32>} : memref<2x4x16x8xf32, #tpu.memory_space<vmem>>, vector<1x1x8x8xf32>,
    %61 = vector.extract_strided_slice %8 {offsets = [0, 16], sizes = [8, 8], strides = [1, 1]} : vector<8x64xf32> to vector<8x8xf32>
    %c0_55 = arith.constant 0 : index
    %c2_56 = arith.constant 2 : index
    %c8_57 = arith.constant 8 : index
    %c0_58 = arith.constant 0 : index
    %62 = vector.load %arg5[%c0_55, %c2_56, %c8_57, %c0_58] : memref<2x4x16x8xf32, #tpu.memory_space<vmem>>, vector<1x1x8x8xf32>
    %63 = vector.shape_cast %62 : vector<1x1x8x8xf32> to vector<8x8xf32>
    %64 = vector.shape_cast %61 : vector<8x8xf32> to vector<1x1x8x8xf32>
    tpu.vector_store %arg5[%c0_55, %c2_56, %c8_57, %c0_58], %64 {strides = array<i32>} : memref<2x4x16x8xf32, #tpu.memory_space<vmem>>, vector<1x1x8x8xf32>,
    %65 = vector.extract_strided_slice %8 {offsets = [0, 48], sizes = [8, 8], strides = [1, 1]} : vector<8x64xf32> to vector<8x8xf32>
    %c0_59 = arith.constant 0 : index
    %c2_60 = arith.constant 2 : index
    %c8_61 = arith.constant 8 : index
    %c0_62 = arith.constant 0 : index
    %66 = vector.load %arg6[%c0_59, %c2_60, %c8_61, %c0_62] : memref<2x4x16x8xf32, #tpu.memory_space<vmem>>, vector<1x1x8x8xf32>
    %67 = vector.shape_cast %66 : vector<1x1x8x8xf32> to vector<8x8xf32>
    %68 = vector.shape_cast %65 : vector<8x8xf32> to vector<1x1x8x8xf32>
    tpu.vector_store %arg6[%c0_59, %c2_60, %c8_61, %c0_62], %68 {strides = array<i32>} : memref<2x4x16x8xf32, #tpu.memory_space<vmem>>, vector<1x1x8x8xf32>,
    %69 = vector.extract_strided_slice %7 {offsets = [0, 24], sizes = [8, 8], strides = [1, 1]} : vector<8x96xf32> to vector<8x8xf32>
    %c0_63 = arith.constant 0 : index
    %c3 = arith.constant 3 : index
    %c0_64 = arith.constant 0 : index
    %c0_65 = arith.constant 0 : index
    %70 = vector.load %arg4[%c0_63, %c3, %c0_64, %c0_65] : memref<2x4x8x8xf32, #tpu.memory_space<vmem>>, vector<1x1x8x8xf32>
    %71 = vector.shape_cast %70 : vector<1x1x8x8xf32> to vector<8x8xf32>
    %72 = vector.shape_cast %69 : vector<8x8xf32> to vector<1x1x8x8xf32>
    tpu.vector_store %arg4[%c0_63, %c3, %c0_64, %c0_65], %72 {strides = array<i32>} : memref<2x4x8x8xf32, #tpu.memory_space<vmem>>, vector<1x1x8x8xf32>,
    %73 = vector.extract_strided_slice %7 {offsets = [0, 56], sizes = [8, 8], strides = [1, 1]} : vector<8x96xf32> to vector<8x8xf32>
    %c0_66 = arith.constant 0 : index
    %c3_67 = arith.constant 3 : index
    %c0_68 = arith.constant 0 : index
    %c0_69 = arith.constant 0 : index
    %74 = vector.load %arg5[%c0_66, %c3_67, %c0_68, %c0_69] : memref<2x4x16x8xf32, #tpu.memory_space<vmem>>, vector<1x1x8x8xf32>
    %75 = vector.shape_cast %74 : vector<1x1x8x8xf32> to vector<8x8xf32>
    %76 = vector.shape_cast %73 : vector<8x8xf32> to vector<1x1x8x8xf32>
    tpu.vector_store %arg5[%c0_66, %c3_67, %c0_68, %c0_69], %76 {strides = array<i32>} : memref<2x4x16x8xf32, #tpu.memory_space<vmem>>, vector<1x1x8x8xf32>,
    %77 = vector.extract_strided_slice %7 {offsets = [0, 88], sizes = [8, 8], strides = [1, 1]} : vector<8x96xf32> to vector<8x8xf32>
    %c0_70 = arith.constant 0 : index
    %c3_71 = arith.constant 3 : index
    %c0_72 = arith.constant 0 : index
    %c0_73 = arith.constant 0 : index
    %78 = vector.load %arg6[%c0_70, %c3_71, %c0_72, %c0_73] : memref<2x4x16x8xf32, #tpu.memory_space<vmem>>, vector<1x1x8x8xf32>
    %79 = vector.shape_cast %78 : vector<1x1x8x8xf32> to vector<8x8xf32>
    %80 = vector.shape_cast %77 : vector<8x8xf32> to vector<1x1x8x8xf32>
    tpu.vector_store %arg6[%c0_70, %c3_71, %c0_72, %c0_73], %80 {strides = array<i32>} : memref<2x4x16x8xf32, #tpu.memory_space<vmem>>, vector<1x1x8x8xf32>,
    %81 = vector.extract_strided_slice %8 {offsets = [0, 24], sizes = [8, 8], strides = [1, 1]} : vector<8x64xf32> to vector<8x8xf32>
    %c0_74 = arith.constant 0 : index
    %c3_75 = arith.constant 3 : index
    %c8_76 = arith.constant 8 : index
    %c0_77 = arith.constant 0 : index
    %82 = vector.load %arg5[%c0_74, %c3_75, %c8_76, %c0_77] : memref<2x4x16x8xf32, #tpu.memory_space<vmem>>, vector<1x1x8x8xf32>
    %83 = vector.shape_cast %82 : vector<1x1x8x8xf32> to vector<8x8xf32>
    %84 = vector.shape_cast %81 : vector<8x8xf32> to vector<1x1x8x8xf32>
    tpu.vector_store %arg5[%c0_74, %c3_75, %c8_76, %c0_77], %84 {strides = array<i32>} : memref<2x4x16x8xf32, #tpu.memory_space<vmem>>, vector<1x1x8x8xf32>,
    %85 = vector.extract_strided_slice %8 {offsets = [0, 56], sizes = [8, 8], strides = [1, 1]} : vector<8x64xf32> to vector<8x8xf32>
    %c0_78 = arith.constant 0 : index
    %c3_79 = arith.constant 3 : index
    %c8_80 = arith.constant 8 : index
    %c0_81 = arith.constant 0 : index
    %86 = vector.load %arg6[%c0_78, %c3_79, %c8_80, %c0_81] : memref<2x4x16x8xf32, #tpu.memory_space<vmem>>, vector<1x1x8x8xf32>
    %87 = vector.shape_cast %86 : vector<1x1x8x8xf32> to vector<8x8xf32>
    %88 = vector.shape_cast %85 : vector<8x8xf32> to vector<1x1x8x8xf32>
    tpu.vector_store %arg6[%c0_78, %c3_79, %c8_80, %c0_81], %88 {strides = array<i32>} : memref<2x4x16x8xf32, #tpu.memory_space<vmem>>, vector<1x1x8x8xf32>,
    %89 = vector.extract_strided_slice %6 {offsets = [8, 0], sizes = [8, 96], strides = [1, 1]} : vector<16x160xf32> to vector<8x96xf32>
    %90 = vector.extract_strided_slice %6 {offsets = [8, 96], sizes = [8, 64], strides = [1, 1]} : vector<16x160xf32> to vector<8x64xf32>
    %91 = vector.extract_strided_slice %89 {offsets = [0, 0], sizes = [8, 8], strides = [1, 1]} : vector<8x96xf32> to vector<8x8xf32>
    %c1_82 = arith.constant 1 : index
    %c0_83 = arith.constant 0 : index
    %c0_84 = arith.constant 0 : index
    %c0_85 = arith.constant 0 : index
    %92 = vector.load %arg4[%c1_82, %c0_83, %c0_84, %c0_85] : memref<2x4x8x8xf32, #tpu.memory_space<vmem>>, vector<1x1x8x8xf32>
    %93 = vector.shape_cast %92 : vector<1x1x8x8xf32> to vector<8x8xf32>
    %94 = vector.shape_cast %91 : vector<8x8xf32> to vector<1x1x8x8xf32>
    tpu.vector_store %arg4[%c1_82, %c0_83, %c0_84, %c0_85], %94 {strides = array<i32>} : memref<2x4x8x8xf32, #tpu.memory_space<vmem>>, vector<1x1x8x8xf32>,
    %95 = vector.extract_strided_slice %89 {offsets = [0, 32], sizes = [8, 8], strides = [1, 1]} : vector<8x96xf32> to vector<8x8xf32>
    %c1_86 = arith.constant 1 : index
    %c0_87 = arith.constant 0 : index
    %c0_88 = arith.constant 0 : index
    %c0_89 = arith.constant 0 : index
    %96 = vector.load %arg5[%c1_86, %c0_87, %c0_88, %c0_89] : memref<2x4x16x8xf32, #tpu.memory_space<vmem>>, vector<1x1x8x8xf32>
    %97 = vector.shape_cast %96 : vector<1x1x8x8xf32> to vector<8x8xf32>
    %98 = vector.shape_cast %95 : vector<8x8xf32> to vector<1x1x8x8xf32>
    tpu.vector_store %arg5[%c1_86, %c0_87, %c0_88, %c0_89], %98 {strides = array<i32>} : memref<2x4x16x8xf32, #tpu.memory_space<vmem>>, vector<1x1x8x8xf32>,
    %99 = vector.extract_strided_slice %89 {offsets = [0, 64], sizes = [8, 8], strides = [1, 1]} : vector<8x96xf32> to vector<8x8xf32>
    %c1_90 = arith.constant 1 : index
    %c0_91 = arith.constant 0 : index
    %c0_92 = arith.constant 0 : index
    %c0_93 = arith.constant 0 : index
    %100 = vector.load %arg6[%c1_90, %c0_91, %c0_92, %c0_93] : memref<2x4x16x8xf32, #tpu.memory_space<vmem>>, vector<1x1x8x8xf32>
    %101 = vector.shape_cast %100 : vector<1x1x8x8xf32> to vector<8x8xf32>
    %102 = vector.shape_cast %99 : vector<8x8xf32> to vector<1x1x8x8xf32>
    tpu.vector_store %arg6[%c1_90, %c0_91, %c0_92, %c0_93], %102 {strides = array<i32>} : memref<2x4x16x8xf32, #tpu.memory_space<vmem>>, vector<1x1x8x8xf32>,
    %103 = vector.extract_strided_slice %90 {offsets = [0, 0], sizes = [8, 8], strides = [1, 1]} : vector<8x64xf32> to vector<8x8xf32>
    %c1_94 = arith.constant 1 : index
    %c0_95 = arith.constant 0 : index
    %c8_96 = arith.constant 8 : index
    %c0_97 = arith.constant 0 : index
    %104 = vector.load %arg5[%c1_94, %c0_95, %c8_96, %c0_97] : memref<2x4x16x8xf32, #tpu.memory_space<vmem>>, vector<1x1x8x8xf32>
    %105 = vector.shape_cast %104 : vector<1x1x8x8xf32> to vector<8x8xf32>
    %106 = vector.shape_cast %103 : vector<8x8xf32> to vector<1x1x8x8xf32>
    tpu.vector_store %arg5[%c1_94, %c0_95, %c8_96, %c0_97], %106 {strides = array<i32>} : memref<2x4x16x8xf32, #tpu.memory_space<vmem>>, vector<1x1x8x8xf32>,
    %107 = vector.extract_strided_slice %90 {offsets = [0, 32], sizes = [8, 8], strides = [1, 1]} : vector<8x64xf32> to vector<8x8xf32>
    %c1_98 = arith.constant 1 : index
    %c0_99 = arith.constant 0 : index
    %c8_100 = arith.constant 8 : index
    %c0_101 = arith.constant 0 : index
    %108 = vector.load %arg6[%c1_98, %c0_99, %c8_100, %c0_101] : memref<2x4x16x8xf32, #tpu.memory_space<vmem>>, vector<1x1x8x8xf32>
    %109 = vector.shape_cast %108 : vector<1x1x8x8xf32> to vector<8x8xf32>
    %110 = vector.shape_cast %107 : vector<8x8xf32> to vector<1x1x8x8xf32>
    tpu.vector_store %arg6[%c1_98, %c0_99, %c8_100, %c0_101], %110 {strides = array<i32>} : memref<2x4x16x8xf32, #tpu.memory_space<vmem>>, vector<1x1x8x8xf32>,
    %111 = vector.extract_strided_slice %89 {offsets = [0, 8], sizes = [8, 8], strides = [1, 1]} : vector<8x96xf32> to vector<8x8xf32>
    %c1_102 = arith.constant 1 : index
    %c1_103 = arith.constant 1 : index
    %c0_104 = arith.constant 0 : index
    %c0_105 = arith.constant 0 : index
    %112 = vector.load %arg4[%c1_102, %c1_103, %c0_104, %c0_105] : memref<2x4x8x8xf32, #tpu.memory_space<vmem>>, vector<1x1x8x8xf32>
    %113 = vector.shape_cast %112 : vector<1x1x8x8xf32> to vector<8x8xf32>
    %114 = vector.shape_cast %111 : vector<8x8xf32> to vector<1x1x8x8xf32>
    tpu.vector_store %arg4[%c1_102, %c1_103, %c0_104, %c0_105], %114 {strides = array<i32>} : memref<2x4x8x8xf32, #tpu.memory_space<vmem>>, vector<1x1x8x8xf32>,
    %115 = vector.extract_strided_slice %89 {offsets = [0, 40], sizes = [8, 8], strides = [1, 1]} : vector<8x96xf32> to vector<8x8xf32>
    %c1_106 = arith.constant 1 : index
    %c1_107 = arith.constant 1 : index
    %c0_108 = arith.constant 0 : index
    %c0_109 = arith.constant 0 : index
    %116 = vector.load %arg5[%c1_106, %c1_107, %c0_108, %c0_109] : memref<2x4x16x8xf32, #tpu.memory_space<vmem>>, vector<1x1x8x8xf32>
    %117 = vector.shape_cast %116 : vector<1x1x8x8xf32> to vector<8x8xf32>
    %118 = vector.shape_cast %115 : vector<8x8xf32> to vector<1x1x8x8xf32>
    tpu.vector_store %arg5[%c1_106, %c1_107, %c0_108, %c0_109], %118 {strides = array<i32>} : memref<2x4x16x8xf32, #tpu.memory_space<vmem>>, vector<1x1x8x8xf32>,
    %119 = vector.extract_strided_slice %89 {offsets = [0, 72], sizes = [8, 8], strides = [1, 1]} : vector<8x96xf32> to vector<8x8xf32>
    %c1_110 = arith.constant 1 : index
    %c1_111 = arith.constant 1 : index
    %c0_112 = arith.constant 0 : index
    %c0_113 = arith.constant 0 : index
    %120 = vector.load %arg6[%c1_110, %c1_111, %c0_112, %c0_113] : memref<2x4x16x8xf32, #tpu.memory_space<vmem>>, vector<1x1x8x8xf32>
    %121 = vector.shape_cast %120 : vector<1x1x8x8xf32> to vector<8x8xf32>
    %122 = vector.shape_cast %119 : vector<8x8xf32> to vector<1x1x8x8xf32>
    tpu.vector_store %arg6[%c1_110, %c1_111, %c0_112, %c0_113], %122 {strides = array<i32>} : memref<2x4x16x8xf32, #tpu.memory_space<vmem>>, vector<1x1x8x8xf32>,
    %123 = vector.extract_strided_slice %90 {offsets = [0, 8], sizes = [8, 8], strides = [1, 1]} : vector<8x64xf32> to vector<8x8xf32>
    %c1_114 = arith.constant 1 : index
    %c1_115 = arith.constant 1 : index
    %c8_116 = arith.constant 8 : index
    %c0_117 = arith.constant 0 : index
    %124 = vector.load %arg5[%c1_114, %c1_115, %c8_116, %c0_117] : memref<2x4x16x8xf32, #tpu.memory_space<vmem>>, vector<1x1x8x8xf32>
    %125 = vector.shape_cast %124 : vector<1x1x8x8xf32> to vector<8x8xf32>
    %126 = vector.shape_cast %123 : vector<8x8xf32> to vector<1x1x8x8xf32>
    tpu.vector_store %arg5[%c1_114, %c1_115, %c8_116, %c0_117], %126 {strides = array<i32>} : memref<2x4x16x8xf32, #tpu.memory_space<vmem>>, vector<1x1x8x8xf32>,
    %127 = vector.extract_strided_slice %90 {offsets = [0, 40], sizes = [8, 8], strides = [1, 1]} : vector<8x64xf32> to vector<8x8xf32>
    %c1_118 = arith.constant 1 : index
    %c1_119 = arith.constant 1 : index
    %c8_120 = arith.constant 8 : index
    %c0_121 = arith.constant 0 : index
    %128 = vector.load %arg6[%c1_118, %c1_119, %c8_120, %c0_121] : memref<2x4x16x8xf32, #tpu.memory_space<vmem>>, vector<1x1x8x8xf32>
    %129 = vector.shape_cast %128 : vector<1x1x8x8xf32> to vector<8x8xf32>
    %130 = vector.shape_cast %127 : vector<8x8xf32> to vector<1x1x8x8xf32>
    tpu.vector_store %arg6[%c1_118, %c1_119, %c8_120, %c0_121], %130 {strides = array<i32>} : memref<2x4x16x8xf32, #tpu.memory_space<vmem>>, vector<1x1x8x8xf32>,
    %131 = vector.extract_strided_slice %89 {offsets = [0, 16], sizes = [8, 8], strides = [1, 1]} : vector<8x96xf32> to vector<8x8xf32>
    %c1_122 = arith.constant 1 : index
    %c2_123 = arith.constant 2 : index
    %c0_124 = arith.constant 0 : index
    %c0_125 = arith.constant 0 : index
    %132 = vector.load %arg4[%c1_122, %c2_123, %c0_124, %c0_125] : memref<2x4x8x8xf32, #tpu.memory_space<vmem>>, vector<1x1x8x8xf32>
    %133 = vector.shape_cast %132 : vector<1x1x8x8xf32> to vector<8x8xf32>
    %134 = vector.shape_cast %131 : vector<8x8xf32> to vector<1x1x8x8xf32>
    tpu.vector_store %arg4[%c1_122, %c2_123, %c0_124, %c0_125], %134 {strides = array<i32>} : memref<2x4x8x8xf32, #tpu.memory_space<vmem>>, vector<1x1x8x8xf32>,
    %135 = vector.extract_strided_slice %89 {offsets = [0, 48], sizes = [8, 8], strides = [1, 1]} : vector<8x96xf32> to vector<8x8xf32>
    %c1_126 = arith.constant 1 : index
    %c2_127 = arith.constant 2 : index
    %c0_128 = arith.constant 0 : index
    %c0_129 = arith.constant 0 : index
    %136 = vector.load %arg5[%c1_126, %c2_127, %c0_128, %c0_129] : memref<2x4x16x8xf32, #tpu.memory_space<vmem>>, vector<1x1x8x8xf32>
    %137 = vector.shape_cast %136 : vector<1x1x8x8xf32> to vector<8x8xf32>
    %138 = vector.shape_cast %135 : vector<8x8xf32> to vector<1x1x8x8xf32>
    tpu.vector_store %arg5[%c1_126, %c2_127, %c0_128, %c0_129], %138 {strides = array<i32>} : memref<2x4x16x8xf32, #tpu.memory_space<vmem>>, vector<1x1x8x8xf32>,
    %139 = vector.extract_strided_slice %89 {offsets = [0, 80], sizes = [8, 8], strides = [1, 1]} : vector<8x96xf32> to vector<8x8xf32>
    %c1_130 = arith.constant 1 : index
    %c2_131 = arith.constant 2 : index
    %c0_132 = arith.constant 0 : index
    %c0_133 = arith.constant 0 : index
    %140 = vector.load %arg6[%c1_130, %c2_131, %c0_132, %c0_133] : memref<2x4x16x8xf32, #tpu.memory_space<vmem>>, vector<1x1x8x8xf32>
    %141 = vector.shape_cast %140 : vector<1x1x8x8xf32> to vector<8x8xf32>
    %142 = vector.shape_cast %139 : vector<8x8xf32> to vector<1x1x8x8xf32>
    tpu.vector_store %arg6[%c1_130, %c2_131, %c0_132, %c0_133], %142 {strides = array<i32>} : memref<2x4x16x8xf32, #tpu.memory_space<vmem>>, vector<1x1x8x8xf32>,
    %143 = vector.extract_strided_slice %90 {offsets = [0, 16], sizes = [8, 8], strides = [1, 1]} : vector<8x64xf32> to vector<8x8xf32>
    %c1_134 = arith.constant 1 : index
    %c2_135 = arith.constant 2 : index
    %c8_136 = arith.constant 8 : index
    %c0_137 = arith.constant 0 : index
    %144 = vector.load %arg5[%c1_134, %c2_135, %c8_136, %c0_137] : memref<2x4x16x8xf32, #tpu.memory_space<vmem>>, vector<1x1x8x8xf32>
    %145 = vector.shape_cast %144 : vector<1x1x8x8xf32> to vector<8x8xf32>
    %146 = vector.shape_cast %143 : vector<8x8xf32> to vector<1x1x8x8xf32>
    tpu.vector_store %arg5[%c1_134, %c2_135, %c8_136, %c0_137], %146 {strides = array<i32>} : memref<2x4x16x8xf32, #tpu.memory_space<vmem>>, vector<1x1x8x8xf32>,
    %147 = vector.extract_strided_slice %90 {offsets = [0, 48], sizes = [8, 8], strides = [1, 1]} : vector<8x64xf32> to vector<8x8xf32>
    %c1_138 = arith.constant 1 : index
    %c2_139 = arith.constant 2 : index
    %c8_140 = arith.constant 8 : index
    %c0_141 = arith.constant 0 : index
    %148 = vector.load %arg6[%c1_138, %c2_139, %c8_140, %c0_141] : memref<2x4x16x8xf32, #tpu.memory_space<vmem>>, vector<1x1x8x8xf32>
    %149 = vector.shape_cast %148 : vector<1x1x8x8xf32> to vector<8x8xf32>
    %150 = vector.shape_cast %147 : vector<8x8xf32> to vector<1x1x8x8xf32>
    tpu.vector_store %arg6[%c1_138, %c2_139, %c8_140, %c0_141], %150 {strides = array<i32>} : memref<2x4x16x8xf32, #tpu.memory_space<vmem>>, vector<1x1x8x8xf32>,
    %151 = vector.extract_strided_slice %89 {offsets = [0, 24], sizes = [8, 8], strides = [1, 1]} : vector<8x96xf32> to vector<8x8xf32>
    %c1_142 = arith.constant 1 : index
    %c3_143 = arith.constant 3 : index
    %c0_144 = arith.constant 0 : index
    %c0_145 = arith.constant 0 : index
    %152 = vector.load %arg4[%c1_142, %c3_143, %c0_144, %c0_145] : memref<2x4x8x8xf32, #tpu.memory_space<vmem>>, vector<1x1x8x8xf32>
    %153 = vector.shape_cast %152 : vector<1x1x8x8xf32> to vector<8x8xf32>
    %154 = vector.shape_cast %151 : vector<8x8xf32> to vector<1x1x8x8xf32>
    tpu.vector_store %arg4[%c1_142, %c3_143, %c0_144, %c0_145], %154 {strides = array<i32>} : memref<2x4x8x8xf32, #tpu.memory_space<vmem>>, vector<1x1x8x8xf32>,
    %155 = vector.extract_strided_slice %89 {offsets = [0, 56], sizes = [8, 8], strides = [1, 1]} : vector<8x96xf32> to vector<8x8xf32>
    %c1_146 = arith.constant 1 : index
    %c3_147 = arith.constant 3 : index
    %c0_148 = arith.constant 0 : index
    %c0_149 = arith.constant 0 : index
    %156 = vector.load %arg5[%c1_146, %c3_147, %c0_148, %c0_149] : memref<2x4x16x8xf32, #tpu.memory_space<vmem>>, vector<1x1x8x8xf32>
    %157 = vector.shape_cast %156 : vector<1x1x8x8xf32> to vector<8x8xf32>
    %158 = vector.shape_cast %155 : vector<8x8xf32> to vector<1x1x8x8xf32>
    tpu.vector_store %arg5[%c1_146, %c3_147, %c0_148, %c0_149], %158 {strides = array<i32>} : memref<2x4x16x8xf32, #tpu.memory_space<vmem>>, vector<1x1x8x8xf32>,
    %159 = vector.extract_strided_slice %89 {offsets = [0, 88], sizes = [8, 8], strides = [1, 1]} : vector<8x96xf32> to vector<8x8xf32>
    %c1_150 = arith.constant 1 : index
    %c3_151 = arith.constant 3 : index
    %c0_152 = arith.constant 0 : index
    %c0_153 = arith.constant 0 : index
    %160 = vector.load %arg6[%c1_150, %c3_151, %c0_152, %c0_153] : memref<2x4x16x8xf32, #tpu.memory_space<vmem>>, vector<1x1x8x8xf32>
    %161 = vector.shape_cast %160 : vector<1x1x8x8xf32> to vector<8x8xf32>
    %162 = vector.shape_cast %159 : vector<8x8xf32> to vector<1x1x8x8xf32>
    tpu.vector_store %arg6[%c1_150, %c3_151, %c0_152, %c0_153], %162 {strides = array<i32>} : memref<2x4x16x8xf32, #tpu.memory_space<vmem>>, vector<1x1x8x8xf32>,
    %163 = vector.extract_strided_slice %90 {offsets = [0, 24], sizes = [8, 8], strides = [1, 1]} : vector<8x64xf32> to vector<8x8xf32>
    %c1_154 = arith.constant 1 : index
    %c3_155 = arith.constant 3 : index
    %c8_156 = arith.constant 8 : index
    %c0_157 = arith.constant 0 : index
    %164 = vector.load %arg5[%c1_154, %c3_155, %c8_156, %c0_157] : memref<2x4x16x8xf32, #tpu.memory_space<vmem>>, vector<1x1x8x8xf32>
    %165 = vector.shape_cast %164 : vector<1x1x8x8xf32> to vector<8x8xf32>
    %166 = vector.shape_cast %163 : vector<8x8xf32> to vector<1x1x8x8xf32>
    tpu.vector_store %arg5[%c1_154, %c3_155, %c8_156, %c0_157], %166 {strides = array<i32>} : memref<2x4x16x8xf32, #tpu.memory_space<vmem>>, vector<1x1x8x8xf32>,
    %167 = vector.extract_strided_slice %90 {offsets = [0, 56], sizes = [8, 8], strides = [1, 1]} : vector<8x64xf32> to vector<8x8xf32>
    %c1_158 = arith.constant 1 : index
    %c3_159 = arith.constant 3 : index
    %c8_160 = arith.constant 8 : index
    %c0_161 = arith.constant 0 : index
    %168 = vector.load %arg6[%c1_158, %c3_159, %c8_160, %c0_161] : memref<2x4x16x8xf32, #tpu.memory_space<vmem>>, vector<1x1x8x8xf32>
    %169 = vector.shape_cast %168 : vector<1x1x8x8xf32> to vector<8x8xf32>
    %170 = vector.shape_cast %167 : vector<8x8xf32> to vector<1x1x8x8xf32>
    tpu.vector_store %arg6[%c1_158, %c3_159, %c8_160, %c0_161], %170 {strides = array<i32>} : memref<2x4x16x8xf32, #tpu.memory_space<vmem>>, vector<1x1x8x8xf32>,
    return
  }
  func.func @transform_0(%arg0: i32) -> (i32, i32, i32) {
    %c0_i32 = arith.constant 0 : i32
    %c0_i32_0 = arith.constant 0 : i32
    %c0_i32_1 = arith.constant 0 : i32
    return %arg0, %c0_i32, %c0_i32_0 : i32, i32, i32
  }
  func.func @transform_1(%arg0: i32) -> (i32, i32) {
    %c0_i32 = arith.constant 0 : i32
    %c0_i32_0 = arith.constant 0 : i32
    %c0_i32_1 = arith.constant 0 : i32
    return %c0_i32, %c0_i32_0 : i32, i32
  }
  func.func @transform_2(%arg0: i32) -> (i32, i32) {
    %c0_i32 = arith.constant 0 : i32
    %c0_i32_0 = arith.constant 0 : i32
    %c0_i32_1 = arith.constant 0 : i32
    return %c0_i32, %c0_i32_0 : i32, i32
  }
  func.func @transform_3(%arg0: i32) -> (i32, i32, i32, i32) {
    %c0_i32 = arith.constant 0 : i32
    %c0_i32_0 = arith.constant 0 : i32
    %c0_i32_1 = arith.constant 0 : i32
    %c0_i32_2 = arith.constant 0 : i32
    return %arg0, %c0_i32, %c0_i32_0, %c0_i32_1 : i32, i32, i32, i32
  }
  func.func @transform_4(%arg0: i32) -> (i32, i32, i32, i32) {
    %c0_i32 = arith.constant 0 : i32
    %c0_i32_0 = arith.constant 0 : i32
    %c0_i32_1 = arith.constant 0 : i32
    %c0_i32_2 = arith.constant 0 : i32
    return %arg0, %c0_i32, %c0_i32_0, %c0_i32_1 : i32, i32, i32, i32
  }
  func.func @transform_5(%arg0: i32) -> (i32, i32, i32, i32) {
    %c0_i32 = arith.constant 0 : i32
    %c0_i32_0 = arith.constant 0 : i32
    %c0_i32_1 = arith.constant 0 : i32
    %c0_i32_2 = arith.constant 0 : i32
    return %arg0, %c0_i32, %c0_i32_0, %c0_i32_1 : i32, i32, i32, i32
  }
}

</mosaic_0001>

<bundles_post_ra>
// kernel: tpu_custom_call.1
= control target key start
LH: loop header
LB: loop body
LE: loop exit
PB: predicated region body
PF: predicated region fallthrough
CT: control target
= control target key end

     0   :  { %11 = vsyncpa [#allocation3], 0  ;;  %s699_s0 = inlined_call_operand.hbm [shape: f32[2,8,32], index: 0, kind: input, shape index: {}]   ;;  %s700_s1 = inlined_call_operand.hbm [shape: f32[32,160], index: 1, kind: input, shape index: {}]   ;;  %s701_s2 = inlined_call_operand.vmem [shape: f32[1,160], index: 2, kind: input, shape index: {}]   ;;  %s702_s3 = inlined_call_operand.hbm [shape: f32[2,4,8,8], index: 3, kind: output, shape index: {0}]   ;;  %s703_s4 = inlined_call_operand.vmem [shape: f32[2,4,16,8], index: 4, kind: output, shape index: {1}]   ;;  %s704_s5 = inlined_call_operand.vmem [shape: f32[2,4,16,8], index: 5, kind: output, shape index: {2}]  }
   0x1   :  { %12 = vsyncpa [#allocation6], 0 }
   0x2   :  { %13 = vsyncpa [#allocation4], 0  ;;  %s477_s18 = smov [#allocation2]  }
   0x3   :  { %s19_s19 = sshll.u32 %s477_s18, 4  ;;  %s20_s19 = int_to_ptr.vmem [resolvable:$true] %s19_s19 }
   0x4   :  { %s419_s20 = scalar_lea.vmem %s20_s19, 256  ;;  %p424_p1 = scmp.lt.s32.totalorder %s20_s19, %s20_s19 }
   0x5   :  { %p420_p0 = scmp.ne.s32.totalorder %s20_s19, %s419_s20  ;;  %p425_p2 = scmp.lt.s32.totalorder %s419_s20, %s419_s20 }
   0x7   :  { %p426_p3 = por %p425_p2, %p424_p1 }
   0x9   :  { %p427_p4 = pnand %p426_p3, %p420_p0 }
   0xb   :  { %430 = shalt.err (!%p427_p4)
}
   0xc   :  { %s478_s21 = smov 128   ;;  %s479_s22 = smov 8  }
   0xd   :  { %25 = dma.hbm_to_vmem [thread:$0]  %s699_s0, 256, %s20_s19, [#allocation3], %s478_s21, %s478_s21, %s479_s22  }
   0xe   :  { %s480_s25 = smov [#allocation5]  }
   0xf   :  { %s31_s26 = sshll.u32 %s480_s25, 4  ;;  %s32_s26 = int_to_ptr.vmem [resolvable:$true] %s31_s26 }
  0x10   :  { %s439_s27 = scalar_lea.vmem %s32_s26, 1024  ;;  %p444_p6 = scmp.lt.s32.totalorder %s32_s26, %s32_s26 }
  0x11   :  { %p440_p5 = scmp.ne.s32.totalorder %s32_s26, %s439_s27  ;;  %p445_p7 = scmp.lt.s32.totalorder %s439_s27, %s439_s27 }
  0x13   :  { %p446_p8 = por %p445_p7, %p444_p6 }
  0x15   :  { %p447_p9 = pnand %p446_p8, %p440_p5 }
  0x17   :  { %450 = shalt.err (!%p447_p9)
}
  0x18   :  { %s481_s28 = smov 256   ;;  %s482_s29 = smov 16  }
  0x19   :  { %37 = dma.hbm_to_vmem [thread:$0]  %s700_s1, 1024, %s32_s26, [#allocation6], %s481_s28, %s481_s28, %s482_s29  }
  0x1a   :  { %471 = dma.done.wait [#allocation3], 256  }
  0x1b   :  { %472 = vsyncadd [#allocation3], 4294967040 }
  0x1c   :  { %473 = dma.done.wait [#allocation6], 1024  }
  0x1d   :  { %474 = vsyncadd [#allocation6], 4294966272  ;;  %v483_v0 = vmov 0.0   ;;  %v55_v1 = vld [vmem:[#allocation5 + $0x38] sm:$0xff]  ;;  %v54_v2 = vld [vmem:[#allocation5 + $0x30] sm:$0xff]  ;;  %vm68_vm0 = vcmask 261120   ;;  %v58_v11 = vlaneseq }
  0x1e   :  { %139 = vmatprep.mubr.f32.mxu0 %v483_v0  ;;  %145 = vmatprep.mubr.f32.mxu1 %v483_v0  ;;  %v53_v3 = vld [vmem:[#allocation5 + $0x28] sm:$0xff]  ;;  %v52_v4 = vld [vmem:[#allocation5 + $0x20] sm:$0xff]  ;;  %v51_v5 = vld [vmem:[#allocation5 + $0x18] sm:$0xff]  ;;  %vm152_vm1 = vcmask 64512   ;;  %s484_s7 = smov 32   ;;  %s485_s8 = smov 96  }
  0x1f   :  { %99 = vmatprep.subr.mxu0 %v55_v1  ;;  %382 = vmatprep.subr.mxu1 %v55_v1  ;;  %v50_v6 = vld [vmem:[#allocation5 + $0x10] sm:$0xff]  ;;  %v49_v7 = vld [vmem:[#allocation5 + $0x8] sm:$0xff]  ;;  %v48_v8 = vld [vmem:[#allocation5] sm:$0xff]  ;;  %v59_v12 = vshrl.u32 %v58_v11, 7  ;;  %s486_s12 = smov 120   ;;  %s487_s13 = smov 64  }
  0x20   :  { %100 = vmatpush1.msra.mxu0 %v54_v2  ;;  %386 = vmatpush1.msra.mxu1 %v54_v2  ;;  %v46_v9 = vld [vmem:[#allocation2] sm:$0xff]  ;;  %v47_v10 = vld [vmem:[#allocation2 + $0x8] sm:$0xff]  ;;  %s488_s14 = smov 56   ;;  %s489_s15 = smov 88  }
  0x21   :  { %101 = vmatprep.subr.mxu0 %v53_v3  ;;  %383 = vmatprep.subr.mxu1 %v53_v3  ;;  %v60_v13 = vsub.s32 0, %v59_v12  ;;  %v56_v14 = vld [vmem:[%s701_s2] sm:$0x3]  ;;  %v64_v15 = vsub.s32 1, %v59_v12  ;;  %s490_s16 = smov 112   ;;  %s491_s17 = smov 24  }
  0x22   :  { %102 = vmatpush1.msra.mxu0 %v52_v4  ;;  %387 = vmatpush1.msra.mxu1 %v52_v4  ;;  %s492_s18 = smov 104   ;;  %s493_s19 = smov 80  }
  0x23   :  { %103 = vmatprep.subr.mxu0 %v51_v5  ;;  %384 = vmatprep.subr.mxu1 %v51_v5  ;;  %v61_v16 = vrot.slane %v56_v14, %v60_v13  ;;  %v65_v17 = vrot.slane %v56_v14, %v64_v15  ;;  %s494_s20 = smov 48   ;;  %s495_s23 = smov 40  }
  0x24   :  { %104 = vmatpush1.msra.mxu0 %v50_v6  ;;  %388 = vmatpush1.msra.mxu1 %v50_v6  ;;  %s496_s24 = smov 72   ;;  %s497_s9 = smov [#allocation7]  }
  0x25   :  { %105 = vmatprep.subr.mxu0 %v49_v7  ;;  %385 = vmatprep.subr.mxu1 %v49_v7  ;;  %s331_s10 = sshll.u32 %s497_s9, 4  ;;  %s332_s10 = int_to_ptr.vmem [resolvable:$true] %s331_s10 }
  0x26   :  { %106 = vmatpush1.msra.mxu0 %v48_v8  ;;  %389 = vmatpush1.msra.mxu1 %v48_v8  ;;  %s451_s11 = scalar_lea.vmem %s332_s10, 1024  ;;  %p456_p11 = scmp.lt.s32.totalorder %s332_s10, %s332_s10 }
  0x27   :  { %352 = vmatmul.mubr.msk.f32.vlgmr.msra.gmra.mxu0 %vm68_vm0, %v46_v9  ;;  %353 = vmatmul.mubr.msk.f32.vlgmr.msra.gmra.mxu1 %vm68_vm0, %v47_v10  ;;  %p452_p10 = scmp.ne.s32.totalorder %s332_s10, %s451_s11  ;;  %p457_p12 = scmp.lt.s32.totalorder %s451_s11, %s451_s11 }
  0x29   :  { %p458_p13 = por %p457_p12, %p456_p11 }
  0x2b   :  { %p459_p0 = pnand %p458_p13, %p452_p10 }
  0xe7   :  { %v141_v18 = vpop.f32.mrf.mxu0  ;;  %v147_v19 = vpop.f32.mrf.mxu1 }
  0xe8   :  { %v142_v20 = vadd.f32 %v141_v18, %v61_v16  ;;  %v148_v21 = vadd.f32 %v147_v19, %v61_v16 }
  0xe9   :  { %v143_v22 = vpop.f32.mrf.mxu0  ;;  %v149_v23 = vpop.f32.mrf.mxu1 }
  0xea   :  { %v144_v24 = vadd.f32 %v143_v22, %v65_v17  ;;  %153 = vst.msk [vmem:[#allocation7] sm:$0xff] %vm152_vm1, %v142_v20  ;;  %163 = vrot.lane.b32.xlu1 %v142_v20, %s484_s7  ;;  %155 = vrot.lane.b32.xlu0 %v142_v20, %s485_s8  ;;  %239 = vst.msk [vmem:[#allocation7 + $0x20] sm:$0xff] %vm152_vm1, %v148_v21  ;;  %v150_v25 = vadd.f32 %v149_v23, %v65_v17 }
  0xec   :  { %167 = vst.msk [vmem:[%s704_s5 + $0x8] sm:$0xff] %vm152_vm1, %v144_v24  ;;  %369 = vst.msk [vmem:[%s704_s5 + $0x48] sm:$0xff] %vm152_vm1, %v150_v25 }
  0xee   :  { %168 = vrot.lane.b32.xlu1 %v142_v20, %s486_s12  ;;  %159 = vrot.lane.b32.xlu0 %v142_v20, %s487_s13 }
  0xf2   :  { %178 = vrot.lane.b32.xlu1 %v142_v20, %s488_s14  ;;  %173 = vrot.lane.b32.xlu0 %v142_v20, %s489_s15 }
  0xf6   :  { %192 = vrot.lane.b32.xlu1 %v142_v20, %s490_s16  ;;  %183 = vrot.lane.b32.xlu0 %v142_v20, %s491_s17 }
  0xfa   :  { %256 = vrot.lane.b32.xlu1 %v148_v21, %s486_s12  ;;  %215 = vrot.lane.b32.xlu0 %v142_v20, %s492_s18 }
  0xfe   :  { %303 = vrot.lane.b32.xlu1 %v148_v21, %s492_s18  ;;  %280 = vrot.lane.b32.xlu0 %v148_v21, %s490_s16 }
 0x102   :  { %197 = vrot.lane.b32.xlu1 %v142_v20, %s493_s19  ;;  %202 = vrot.lane.b32.xlu0 %v142_v20, %s494_s20 }
 0x106   :  { %207 = vrot.lane.b32.xlu1 %v142_v20, %s482_s29  ;;  %225 = vrot.lane.b32.xlu0 %v142_v20, %s495_s23 }
 0x10a   :  { %220 = vrot.lane.b32.xlu1 %v142_v20, %s496_s24  ;;  %246 = vrot.lane.b32.xlu0 %v148_v21, %s487_s13 }
 0x10e   :  { %230 = vrot.lane.b32.xlu1 %v142_v20, %s479_s22  ;;  %261 = vrot.lane.b32.xlu0 %v148_v21, %s489_s15 }
 0x112   :  { %241 = vrot.lane.b32.xlu1 %v148_v21, %s485_s8  ;;  %271 = vrot.lane.b32.xlu0 %v148_v21, %s491_s17 }
 0x116   :  { %251 = vrot.lane.b32.xlu1 %v148_v21, %s484_s7  ;;  %285 = vrot.lane.b32.xlu0 %v148_v21, %s493_s19 }
 0x11a   :  { %266 = vrot.lane.b32.xlu1 %v148_v21, %s488_s14  ;;  %295 = vrot.lane.b32.xlu0 %v148_v21, %s482_s29 }
 0x11e   :  { %290 = vrot.lane.b32.xlu1 %v148_v21, %s494_s20  ;;  %308 = vrot.lane.b32.xlu0 %v148_v21, %s496_s24 }
 0x122   :  { %313 = vrot.lane.b32.xlu1 %v148_v21, %s495_s23  ;;  %188 = vrot.lane.b32.xlu0 %v144_v24, %s486_s12 }
 0x126   :  { %276 = vrot.lane.b32.xlu1 %v150_v25, %s486_s12  ;;  %211 = vrot.lane.b32.xlu0 %v144_v24, %s490_s16 }
 0x12a   :  { %299 = vrot.lane.b32.xlu1 %v150_v25, %s490_s16  ;;  %234 = vrot.lane.b32.xlu0 %v144_v24, %s492_s18 }
 0x12e   :  { %322 = vrot.lane.b32.xlu1 %v150_v25, %s492_s18  ;;  %318 = vrot.lane.b32.xlu0 %v148_v21, %s479_s22 }
 0x15c   :  { %v164_v26 = vpop.permute.xlu1 %163  ;;  %v156_v27 = vpop.permute.xlu0 %155 }
 0x15d   :  { %166 = vst.msk [vmem:[%s703_s4 + $0x8] sm:$0xff] %vm152_vm1, %v164_v26  ;;  %158 = vst.msk [vmem:[%s703_s4] sm:$0xff] %vm152_vm1, %v156_v27 }
 0x160   :  { %v169_v28 = vpop.permute.xlu1 %168  ;;  %v160_v29 = vpop.permute.xlu0 %159 }
 0x161   :  { %172 = vst.msk [vmem:[#allocation7 + $0x8] sm:$0xff] %vm152_vm1, %v169_v28  ;;  %162 = vst.msk [vmem:[%s704_s5] sm:$0xff] %vm152_vm1, %v160_v29 }
 0x164   :  { %v179_v30 = vpop.permute.xlu1 %178  ;;  %v174_v31 = vpop.permute.xlu0 %173 }
 0x165   :  { %355 = vst.msk [vmem:[%s704_s5 + $0x10] sm:$0xff] %vm152_vm1, %v179_v30  ;;  %354 = vst.msk [vmem:[%s703_s4 + $0x10] sm:$0xff] %vm152_vm1, %v174_v31 }
 0x168   :  { %v193_v32 = vpop.permute.xlu1 %192  ;;  %v184_v33 = vpop.permute.xlu0 %183 }
 0x169   :  { %196 = vst.msk [vmem:[#allocation7 + $0x10] sm:$0xff] %vm152_vm1, %v193_v32  ;;  %356 = vst.msk [vmem:[%s703_s4 + $0x18] sm:$0xff] %vm152_vm1, %v184_v33 }
 0x16c   :  { %v257_v34 = vpop.permute.xlu1 %256  ;;  %v216_v35 = vpop.permute.xlu0 %215 }
 0x16d   :  { %260 = vst.msk [vmem:[#allocation7 + $0x28] sm:$0xff] %vm152_vm1, %v257_v34  ;;  %219 = vst.msk [vmem:[#allocation7 + $0x18] sm:$0xff] %vm152_vm1, %v216_v35 }
 0x170   :  { %v304_v36 = vpop.permute.xlu1 %303  ;;  %v281_v37 = vpop.permute.xlu0 %280 }
 0x171   :  { %307 = vst.msk [vmem:[#allocation7 + $0x38] sm:$0xff] %vm152_vm1, %v304_v36  ;;  %284 = vst.msk [vmem:[#allocation7 + $0x30] sm:$0xff] %vm152_vm1, %v281_v37 }
 0x172   :  { %462 = shalt.err (!%p459_p0)
}
 0x173   :  { %337 = dma.vmem_to_hbm [thread:$0]  %s332_s10, 1024, %s702_s3, [#allocation4], %s478_s21, %s478_s21, %s479_s22  }
 0x174   :  { %v198_v38 = vpop.permute.xlu1 %197  ;;  %v203_v39 = vpop.permute.xlu0 %202 }
 0x175   :  { %358 = vst.msk [vmem:[%s703_s4 + $0x20] sm:$0xff] %vm152_vm1, %v198_v38  ;;  %359 = vst.msk [vmem:[%s704_s5 + $0x20] sm:$0xff] %vm152_vm1, %v203_v39 }
 0x178   :  { %v208_v40 = vpop.permute.xlu1 %207  ;;  %v226_v41 = vpop.permute.xlu0 %225 }
 0x179   :  { %360 = vst.msk [vmem:[%s703_s4 + $0x28] sm:$0xff] %vm152_vm1, %v208_v40  ;;  %363 = vst.msk [vmem:[%s704_s5 + $0x30] sm:$0xff] %vm152_vm1, %v226_v41 }
 0x17c   :  { %v221_v42 = vpop.permute.xlu1 %220  ;;  %v247_v43 = vpop.permute.xlu0 %246 }
 0x17d   :  { %362 = vst.msk [vmem:[%s703_s4 + $0x30] sm:$0xff] %vm152_vm1, %v221_v42  ;;  %367 = vst.msk [vmem:[%s704_s5 + $0x40] sm:$0xff] %vm152_vm1, %v247_v43 }
 0x180   :  { %v231_v44 = vpop.permute.xlu1 %230  ;;  %v262_v45 = vpop.permute.xlu0 %261 }
 0x181   :  { %364 = vst.msk [vmem:[%s703_s4 + $0x38] sm:$0xff] %vm152_vm1, %v231_v44  ;;  %370 = vst.msk [vmem:[%s703_s4 + $0x50] sm:$0xff] %vm152_vm1, %v262_v45 }
 0x184   :  { %v242_v46 = vpop.permute.xlu1 %241  ;;  %v272_v47 = vpop.permute.xlu0 %271 }
 0x185   :  { %366 = vst.msk [vmem:[%s703_s4 + $0x40] sm:$0xff] %vm152_vm1, %v242_v46  ;;  %372 = vst.msk [vmem:[%s703_s4 + $0x58] sm:$0xff] %vm152_vm1, %v272_v47 }
 0x188   :  { %v252_v48 = vpop.permute.xlu1 %251  ;;  %v286_v49 = vpop.permute.xlu0 %285 }
 0x189   :  { %368 = vst.msk [vmem:[%s703_s4 + $0x48] sm:$0xff] %vm152_vm1, %v252_v48  ;;  %374 = vst.msk [vmem:[%s703_s4 + $0x60] sm:$0xff] %vm152_vm1, %v286_v49 }
 0x18c   :  { %v267_v50 = vpop.permute.xlu1 %266  ;;  %v296_v51 = vpop.permute.xlu0 %295 }
 0x18d   :  { %371 = vst.msk [vmem:[%s704_s5 + $0x50] sm:$0xff] %vm152_vm1, %v267_v50  ;;  %376 = vst.msk [vmem:[%s703_s4 + $0x68] sm:$0xff] %vm152_vm1, %v296_v51 }
 0x190   :  { %v291_v52 = vpop.permute.xlu1 %290  ;;  %v309_v53 = vpop.permute.xlu0 %308 }
 0x191   :  { %375 = vst.msk [vmem:[%s704_s5 + $0x60] sm:$0xff] %vm152_vm1, %v291_v52  ;;  %378 = vst.msk [vmem:[%s703_s4 + $0x70] sm:$0xff] %vm152_vm1, %v309_v53 }
 0x194   :  { %v314_v54 = vpop.permute.xlu1 %313  ;;  %v189_v55 = vpop.permute.xlu0 %188 }
 0x195   :  { %379 = vst.msk [vmem:[%s704_s5 + $0x70] sm:$0xff] %vm152_vm1, %v314_v54  ;;  %357 = vst.msk [vmem:[%s704_s5 + $0x18] sm:$0xff] %vm152_vm1, %v189_v55 }
 0x198   :  { %v277_v56 = vpop.permute.xlu1 %276  ;;  %v212_v57 = vpop.permute.xlu0 %211 }
 0x199   :  { %373 = vst.msk [vmem:[%s704_s5 + $0x58] sm:$0xff] %vm152_vm1, %v277_v56  ;;  %361 = vst.msk [vmem:[%s704_s5 + $0x28] sm:$0xff] %vm152_vm1, %v212_v57 }
 0x19c   :  { %v300_v58 = vpop.permute.xlu1 %299  ;;  %v235_v59 = vpop.permute.xlu0 %234 }
 0x19d   :  { %377 = vst.msk [vmem:[%s704_s5 + $0x68] sm:$0xff] %vm152_vm1, %v300_v58  ;;  %365 = vst.msk [vmem:[%s704_s5 + $0x38] sm:$0xff] %vm152_vm1, %v235_v59 }
 0x1a0   :  { %v323_v60 = vpop.permute.xlu1 %322  ;;  %v319_v61 = vpop.permute.xlu0 %318 }
 0x1a1   :  { %381 = vst.msk [vmem:[%s704_s5 + $0x78] sm:$0xff] %vm152_vm1, %v323_v60  ;;  %380 = vst.msk [vmem:[%s703_s4 + $0x78] sm:$0xff] %vm152_vm1, %v319_v61 }
 0x1a2   :  { %475 = dma.done.wait [#allocation4], 1024  }
 0x1a3   :  { %476 = vsyncadd [#allocation4], 4294966272 }
 0x1a4   :  { %349 = vsyncpa [#allocation3], 1 }
 0x1a5   :  { %350 = vsyncpa [#allocation6], 1 }
 0x1a6   :  { %351 = vsyncpa [#allocation4], 1 }

</bundles_post_ra>
